<compile_context>
chip_gen: v5e
topology: v5e:2x2
jax: 0.10.0
libtpu: 0.0.40
codegen_flags: <defaults>
</compile_context>

<pallas_src>
import jax
import jax.numpy as jnp
from jax.experimental import pallas as pl
from jax.experimental.pallas import tpu as pltpu


def _diag_gaussian_mean_kernel(xt_ref, w_ref, b_ref, mean_t_ref):
    # mean^T = W @ x^T + b : one MXU matmul + one VPU add, lane-dense store.
    #   xt_ref     : (D_in, tb)    batch tile on lanes
    #   w_ref      : (D_out, D_in) resident across the whole grid
    #   b_ref      : (D_out, 1)    resident
    #   mean_t_ref : (D_out, tb)
    mean_t = jnp.dot(w_ref[...], xt_ref[...], preferred_element_type=jnp.float32)
    mean_t_ref[...] = (mean_t + b_ref[...]).astype(mean_t_ref.dtype)


def _round_up(n, m):
    return ((n + m - 1) // m) * m


def diag_gaussian_forward(x, weight, bias, logstd, *, batch_tile=512):
    """Forward pass of DiagGaussian.

    Args:
      x      : (B, D_in)      float32 input features.
      weight : (D_out, D_in)  float32 fc_mean.weight (PyTorch layout).
      bias   : (D_out,)       float32 fc_mean.bias.
      logstd : (D_out,)       float32 AddBias parameter of the log-std.
      batch_tile: batch rows processed per grid step (lane tile width).

    Returns:
      mean : (B, D_out)  action_mean
      std  : (1, D_out)  exp(logstd); broadcasts over batch inside Normal().
    """
    B, D_in = x.shape
    D_out, D_in_w = weight.shape
    assert D_in == D_in_w

    # Lane-dense layout: batch on the 128-wide lane axis.
    tb = _round_up(min(batch_tile, _round_up(B, 128)), 128)
    Bp = _round_up(B, tb)

    x_t = x.T  # (D_in, B); an upstream fused producer would ideally emit this layout.
    if Bp != B:
        x_t = jnp.pad(x_t, ((0, 0), (0, Bp - B)))
    b2d = bias.reshape(D_out, 1)

    grid = (Bp // tb,)
    mean_t = pl.pallas_call(
        _diag_gaussian_mean_kernel,
        out_shape=jax.ShapeDtypeStruct((D_out, Bp), jnp.float32),
        grid_spec=pl.GridSpec(
            grid=grid,
            in_specs=[
                pl.BlockSpec((D_in, tb), lambda i: (0, i)),      # x^T batch tile (pipelined)
                pl.BlockSpec((D_out, D_in), lambda i: (0, 0)),   # weight, resident
                pl.BlockSpec((D_out, 1), lambda i: (0, 0)),      # bias, resident
            ],
            out_specs=pl.BlockSpec((D_out, tb), lambda i: (0, i)),
        ),
        compiler_params=pltpu.CompilerParams(
            dimension_semantics=("parallel",)),  # shards batch tiles across TCs on v7x
    )(x_t, weight, b2d)

    # Back to the PyTorch (B, D_out) orientation for the caller.
    # TODO(synk): a fused consumer (Normal log_prob / sample) should take the
    # (D_out, B) slab directly and skip this wrapper transpose.
    mean = mean_t[:, :B].T

    # std = exp(logstd): tiny parameter-only op computed once in the wrapper,
    # instead of a redundant (B, D_out) broadcast store inside the kernel.
    std = jnp.exp(logstd).reshape(1, D_out)
    return mean, std


def init_normc_weight(key, num_outputs, num_inputs):
    """Replicates init_normc_: w ~ N(0,1), then normalize each output row."""
    w = jax.random.normal(key, (num_outputs, num_inputs), dtype=jnp.float32)
    w = w / jnp.sqrt(jnp.sum(w * w, axis=1, keepdims=True))
    return w


if __name__ == "__main__":
    key = jax.random.PRNGKey(0)
    kx, kw, kx2 = jax.random.split(key, 3)

    # Small shapes consistent with the module: hidden features -> action dims.
    B, num_inputs, num_outputs = 2, 32, 8

    x = jax.random.normal(kx, (B, num_inputs), dtype=jnp.float32)
    weight = init_normc_weight(kw, num_outputs, num_inputs)   # (D_out, D_in)
    bias = jnp.zeros((num_outputs,), dtype=jnp.float32)       # nn.init.constant_(0)
    logstd = jnp.zeros((num_outputs,), dtype=jnp.float32)     # AddBias(zeros)

    mean, std = diag_gaussian_forward(x, weight, bias, logstd)
    jax.block_until_ready((mean, std))

    ref_mean = x @ weight.T + bias[None, :]
    ref_std = jnp.exp(logstd)[None, :]
    assert mean.shape == (B, num_outputs)
    assert jnp.allclose(mean, ref_mean, atol=1e-5, rtol=1e-5)
    assert jnp.allclose(std, ref_std, atol=1e-6, rtol=1e-6)

    # Second check: batch that is not a tile multiple -> multi-step grid
    # (exercises padding + pipelined batch tiling + "parallel" semantics).
    B2 = 300
    x2 = jax.random.normal(kx2, (B2, num_inputs), dtype=jnp.float32)
    mean2, std2 = diag_gaussian_forward(x2, weight, bias, logstd, batch_tile=128)
    jax.block_until_ready((mean2, std2))
    ref_mean2 = x2 @ weight.T + bias[None, :]
    assert mean2.shape == (B2, num_outputs)
    assert jnp.allclose(mean2, ref_mean2, atol=1e-5, rtol=1e-5)
    assert jnp.allclose(std2, ref_std, atol=1e-6, rtol=1e-6)

    print("KERNEL_OK")
</pallas_src>

<mosaic_0001>
module attributes {stable_mosaic.version = 11 : i64} {
  func.func @_diag_gaussian_mean_kernel(%arg0: i32, %arg1: memref<32x128xf32, #tpu.memory_space<vmem>>, %arg2: memref<8x32xf32, #tpu.memory_space<vmem>>, %arg3: memref<8x1xf32, #tpu.memory_space<vmem>>, %arg4: memref<8x128xf32, #tpu.memory_space<vmem>>) attributes {dimension_semantics = [#tpu.dimension_semantics<parallel>], iteration_bounds = array<i64: 1>, scalar_prefetch = 0 : i64, scratch_operands = 0 : i64, tpu.core_type = #tpu.core_type<tc>, window_params = [{transform_indices = @transform_0, window_bounds = array<i64: 32, 128>}, {pipeline_mode = #tpu.pipeline_mode<synchronous>, transform_indices = @transform_1, window_bounds = array<i64: 8, 32>}, {pipeline_mode = #tpu.pipeline_mode<synchronous>, transform_indices = @transform_2, window_bounds = array<i64: 8, 1>}, {transform_indices = @transform_3, window_bounds = array<i64: 8, 128>}]} {
    %c0 = arith.constant 0 : index
    %c0_0 = arith.constant 0 : index
    %0 = vector.load %arg2[%c0, %c0_0] : memref<8x32xf32, #tpu.memory_space<vmem>>, vector<8x32xf32>
    %c0_1 = arith.constant 0 : index
    %c0_2 = arith.constant 0 : index
    %1 = vector.load %arg1[%c0_1, %c0_2] : memref<32x128xf32, #tpu.memory_space<vmem>>, vector<32x128xf32>
    %cst = arith.constant dense<0.000000e+00> : vector<8x128xf32>
    %2 = tpu.matmul %0, %1, %cst {dimension_numbers = #tpu.dot_dimension_numbers<[1], [0], [0], [1], [0, 0, 1, 1], [], []>} : vector<8x32xf32>, vector<32x128xf32>, vector<8x128xf32> -> vector<8x128xf32>
    %c0_3 = arith.constant 0 : index
    %c0_4 = arith.constant 0 : index
    %3 = vector.load %arg3[%c0_3, %c0_4] : memref<8x1xf32, #tpu.memory_space<vmem>>, vector<8x1xf32>
    %4 = vector.broadcast %3 : vector<8x1xf32> to vector<8x128xf32>
    %5 = arith.addf %2, %4 : vector<8x128xf32>
    %c0_5 = arith.constant 0 : index
    %c0_6 = arith.constant 0 : index
    %6 = vector.load %arg4[%c0_5, %c0_6] : memref<8x128xf32, #tpu.memory_space<vmem>>, vector<8x128xf32>
    tpu.vector_store %arg4[%c0_5, %c0_6], %5 {strides = array<i32>} : memref<8x128xf32, #tpu.memory_space<vmem>>, vector<8x128xf32>,
    return
  }
  func.func @transform_0(%arg0: i32) -> (i32, i32) {
    %c0_i32 = arith.constant 0 : i32
    %c0_i32_0 = arith.constant 0 : i32
    return %c0_i32, %arg0 : i32, i32
  }
  func.func @transform_1(%arg0: i32) -> (i32, i32) {
    %c0_i32 = arith.constant 0 : i32
    %c0_i32_0 = arith.constant 0 : i32
    %c0_i32_1 = arith.constant 0 : i32
    return %c0_i32, %c0_i32_0 : i32, i32
  }
  func.func @transform_2(%arg0: i32) -> (i32, i32) {
    %c0_i32 = arith.constant 0 : i32
    %c0_i32_0 = arith.constant 0 : i32
    %c0_i32_1 = arith.constant 0 : i32
    return %c0_i32, %c0_i32_0 : i32, i32
  }
  func.func @transform_3(%arg0: i32) -> (i32, i32) {
    %c0_i32 = arith.constant 0 : i32
    %c0_i32_0 = arith.constant 0 : i32
    return %c0_i32, %arg0 : i32, i32
  }
}

</mosaic_0001>

<bundles_post_ra>
// kernel: tpu_custom_call.1
= control target key start
LH: loop header
LB: loop body
LE: loop exit
PB: predicated region body
PF: predicated region fallthrough
CT: control target
= control target key end

     0   :  { %8 = vsyncpa [#allocation3], 0  ;;  %s180_s0 = inlined_call_operand.hbm [shape: f32[32,128], index: 0, kind: input, shape index: {}]   ;;  %s181_s1 = inlined_call_operand.vmem [shape: f32[8,32], index: 1, kind: input, shape index: {}]   ;;  %s182_s2 = inlined_call_operand.vmem [shape: f32[8,1], index: 2, kind: input, shape index: {}]   ;;  %s183_s3 = inlined_call_operand.hbm [shape: f32[8,128], index: 3, kind: output, shape index: {}]  }
   0x1   :  { %9 = vsyncpa [#allocation4], 0  ;;  %s14_s14 = sshll.u32 %s180_s0, 4  ;;  %s143_s15 = smov [#allocation2]   ;;  %s15_s14 = int_to_ptr.hbm [resolvable:$true] %s14_s14 }
   0x2   :  { %s16_s16 = sshll.u32 %s143_s15, 4  ;;  %s144_s17 = smov 128   ;;  %s17_s16 = int_to_ptr.vmem [resolvable:$true] %s16_s16 }
   0x3   :  { %s145_s18 = smov 8  }
   0x4   :  { %22 = dma.hbm_to_vmem [thread:$0]  %s15_s14, 512, %s17_s16, [#allocation3], %s144_s17, %s144_s17, %s145_s18  }
   0x5   :  { %139 = dma.done.wait [#allocation3], 512  }
   0x6   :  { %140 = vsyncadd [#allocation3], 4294966784  ;;  %v146_v0 = vmov 0   ;;  %v35_v1 = vld [vmem:[#allocation2 + $0x18] sm:$0xff]  ;;  %v34_v2 = vld [vmem:[#allocation2 + $0x10] sm:$0xff]  ;;  %vm42_vm0 = vcmask 261120  }
   0x7   :  { %90 = vset.pattern.permute.xlu0 %v146_v0  ;;  %58 = vmatpush.msra.mxu0 %v35_v1  ;;  %v36_v3 = vld [vmem:[%s182_s2] sm:$0xff]  ;;  %v33_v4 = vld [vmem:[#allocation2 + $0x8] sm:$0xff]  ;;  %s147_s22 = smov [#allocation5]   ;;  %s74_s26 = sshll.u32 %s183_s3, 4  ;;  %s75_s26 = int_to_ptr.hbm [resolvable:$true] %s74_s26 }
   0x8   :  { %39 = vperm.xlu0 %90, %v36_v3   ;;  %v32_v5 = vld [vmem:[#allocation2] sm:$0xff]  ;;  %s72_s23 = sshll.u32 %s147_s22, 4  ;;  %s73_s23 = int_to_ptr.vmem [resolvable:$true] %s72_s23 }
   0x9   :  { %59 = vmatpush.msra.mxu0 %v34_v2  ;;  %v31_v6 = vld [vmem:[%s181_s1] sm:$0xff] }
   0xb   :  { %60 = vmatpush.msra.mxu0 %v33_v4 }
   0xd   :  { %61 = vmatpush.msra.mxu0 %v32_v5 }
   0xe   :  { %84 = vmatmul.msk.f32.vlgmr.msra.gmra.mxu0 %vm42_vm0, %v31_v6 }
  0x7a   :  { %v40_v7 = vpop.permute.xlu0 %39 }
  0x8b   :  { %v63_v8 = vpop.f32.mrf.mxu0 }
  0x8c   :  { %v64_v9 = vadd.f32 %v63_v8, %v40_v7 }
  0x8e   :  { %66 = vst [vmem:[#allocation5] sm:$0xff] %v64_v9 }
  0x8f   :  { %77 = dma.vmem_to_hbm [thread:$0]  %s73_s23, 128, %s75_s26, [#allocation4]  }
  0x90   :  { %141 = dma.done.wait [#allocation4], 128  }
  0x91   :  { %142 = vsyncadd [#allocation4], 4294967168 }
  0x92   :  { %82 = vsyncpa [#allocation3], 1 }
  0x93   :  { %83 = vsyncpa [#allocation4], 1 }

</bundles_post_ra>
